<compile_context>
chip_gen: v7x
topology: tpu7x:2x2x1
jax: 0.10.0
libtpu: 0.0.40
codegen_flags: <defaults>
</compile_context>

<pallas_src>
import functools

import jax
import jax.numpy as jnp
from jax.experimental import pallas as pl
from jax.experimental.pallas import tpu as pltpu


def _round_up(n, m):
    return ((n + m - 1) // m) * m


def _g_mapping_kernel(w_lrmuls, mapping_fmaps, *refs):
    # refs = (x_ref, w0, b0, w1, b1, ..., w7, b7, out_ref)
    x_ref = refs[0]
    out_ref = refs[-1]
    param_refs = refs[1:-1]
    n_layers = len(param_refs) // 2

    x = x_ref[...].astype(jnp.float32)                 # (TM, Fp)

    # PixelNorm over the true (unpadded) feature count. Padded lanes are zero
    # so they contribute nothing to the sum of squares.
    sum_sq = jnp.sum(x * x, axis=1, keepdims=True)
    x = x * jax.lax.rsqrt(sum_sq * (1.0 / mapping_fmaps) + 1e-8)

    # Chain of equalized-lr FC layers with leaky_relu(0.2).
    for li in range(n_layers):
        w = param_refs[2 * li][...]                    # (in_p, out_p) bf16
        b = param_refs[2 * li + 1][...]                # (1, out_p) f32, b_lrmul folded
        h = jnp.dot(x.astype(w.dtype), w,
                    preferred_element_type=jnp.float32)
        h = h * w_lrmuls[li] + b                       # scalar scale after the dot
        x = jnp.where(h > 0, h, 0.2 * h)               # leaky_relu(0.2)

    out_ref[...] = x.astype(out_ref.dtype)


def g_mapping_forward(x, weights, biases, w_lrmuls, b_lrmul):
    """x: [B, F] f32; weights[i]: (in_i, out_i) f32; biases[i]: (1, out_i) f32."""
    B, F = x.shape
    dlatent = weights[-1].shape[1]

    # Pad to lane/sublane-friendly shapes.
    Fp = _round_up(F, 128)
    TM = 128 if B >= 128 else _round_up(max(B, 1), 8)
    Bp = _round_up(B, TM)

    x_p = jnp.zeros((Bp, Fp), jnp.float32).at[:B, :F].set(x.astype(jnp.float32))

    w_padded, b_padded = [], []
    for w, b in zip(weights, biases):
        fi, fo = w.shape
        fip, fop = _round_up(fi, 128), _round_up(fo, 128)
        wp = jnp.zeros((fip, fop), jnp.bfloat16).at[:fi, :fo].set(
            w.astype(jnp.bfloat16))
        bp = jnp.zeros((1, fop), jnp.float32).at[:, :fo].set(
            b.astype(jnp.float32) * b_lrmul)           # fold b_lrmul once
        w_padded.append(wp)
        b_padded.append(bp)

    Dp = w_padded[-1].shape[1]

    flat_params = []
    in_specs = [pl.BlockSpec((TM, Fp), lambda i: (i, 0))]
    for wp, bp in zip(w_padded, b_padded):
        flat_params += [wp, bp]
        # Constant index maps: weights/biases stay resident in VMEM across the grid.
        in_specs.append(pl.BlockSpec(wp.shape, lambda i: (0, 0)))
        in_specs.append(pl.BlockSpec(bp.shape, lambda i: (0, 0)))

    kernel = functools.partial(
        _g_mapping_kernel, tuple(float(s) for s in w_lrmuls), int(F))

    out = pl.pallas_call(
        kernel,
        out_shape=jax.ShapeDtypeStruct((Bp, Dp), jnp.float32),
        grid=(Bp // TM,),
        in_specs=in_specs,
        out_specs=pl.BlockSpec((TM, Dp), lambda i: (i, 0)),
        compiler_params=pltpu.CompilerParams(
            dimension_semantics=("parallel",)),
    )(x_p, *flat_params)

    return out[:B, :dlatent]


def init_g_mapping_params(key, mapping_fmaps, hidden_size, dlatent_size,
                          lrmul=0.01, gain=2 ** 0.5, use_wscale=True):
    """Deterministic init matching the PyTorch FC module (use_wscale=True)."""
    dims = [mapping_fmaps] + [hidden_size] * 7 + [dlatent_size]
    weights, biases, w_lrmuls = [], [], []
    for i in range(8):
        fan_in, fan_out = dims[i], dims[i + 1]
        he_std = gain * fan_in ** (-0.5)
        if use_wscale:
            init_std = 1.0 / lrmul
            w_lrmul = he_std * lrmul
        else:
            init_std = he_std / lrmul
            w_lrmul = lrmul
        key, sub = jax.random.split(key)
        # PyTorch stores weight as (out, in); transpose to (in, out) for the kernel.
        w_oi = jax.random.normal(sub, (fan_out, fan_in), jnp.float32) * init_std
        weights.append(jnp.transpose(w_oi))            # (in, out)
        biases.append(jnp.zeros((1, fan_out), jnp.float32))
        w_lrmuls.append(float(w_lrmul))
    b_lrmul = float(lrmul)
    return weights, biases, w_lrmuls, b_lrmul


def _reference_forward(x, weights, biases, w_lrmuls, b_lrmul):
    """Pure-JAX reference mirroring the kernel's mixed precision (bf16 MXU
    inputs, f32 accumulation) so numerics match to float32 rounding."""
    x = x.astype(jnp.float32)
    x = x * jax.lax.rsqrt(jnp.mean(x * x, axis=1, keepdims=True) + 1e-8)
    for w, b, wl in zip(weights, biases, w_lrmuls):
        h = jnp.dot(x.astype(jnp.bfloat16), w.astype(jnp.bfloat16),
                    preferred_element_type=jnp.float32)
        h = h * wl + b.astype(jnp.float32) * b_lrmul
        x = jnp.where(h > 0, h, 0.2 * h)
    return x


if __name__ == "__main__":
    # Small, module-consistent shapes.
    batch = 4
    mapping_fmaps = 32
    hidden_size = 64
    dlatent_size = 48

    key = jax.random.PRNGKey(0)
    key, kx = jax.random.split(key)
    x = jax.random.normal(kx, (batch, mapping_fmaps), jnp.float32)

    weights, biases, w_lrmuls, b_lrmul = init_g_mapping_params(
        key, mapping_fmaps, hidden_size, dlatent_size)

    out = g_mapping_forward(x, weights, biases, w_lrmuls, b_lrmul)
    out = jax.block_until_ready(out)

    ref = _reference_forward(x, weights, biases, w_lrmuls, b_lrmul)
    assert out.shape == (batch, dlatent_size)
    assert jnp.allclose(out, ref, atol=1e-3, rtol=1e-3), (
        float(jnp.max(jnp.abs(out - ref))))

    # TODO(synk): known_filter=True embedding-lookup path not implemented
    # (module default is known_filter=False).
    print("KERNEL_OK")
</pallas_src>

<mosaic_0001>
module attributes {stable_mosaic.version = 11 : i64} {
  func.func @_g_mapping_kernel(%arg0: i32, %arg1: memref<8x128xf32, #tpu.memory_space<vmem>>, %arg2: memref<128x128xbf16, #tpu.memory_space<vmem>>, %arg3: memref<1x128xf32, #tpu.memory_space<vmem>>, %arg4: memref<128x128xbf16, #tpu.memory_space<vmem>>, %arg5: memref<1x128xf32, #tpu.memory_space<vmem>>, %arg6: memref<128x128xbf16, #tpu.memory_space<vmem>>, %arg7: memref<1x128xf32, #tpu.memory_space<vmem>>, %arg8: memref<128x128xbf16, #tpu.memory_space<vmem>>, %arg9: memref<1x128xf32, #tpu.memory_space<vmem>>, %arg10: memref<128x128xbf16, #tpu.memory_space<vmem>>, %arg11: memref<1x128xf32, #tpu.memory_space<vmem>>, %arg12: memref<128x128xbf16, #tpu.memory_space<vmem>>, %arg13: memref<1x128xf32, #tpu.memory_space<vmem>>, %arg14: memref<128x128xbf16, #tpu.memory_space<vmem>>, %arg15: memref<1x128xf32, #tpu.memory_space<vmem>>, %arg16: memref<128x128xbf16, #tpu.memory_space<vmem>>, %arg17: memref<1x128xf32, #tpu.memory_space<vmem>>, %arg18: memref<8x128xf32, #tpu.memory_space<vmem>>) attributes {dimension_semantics = [#tpu.dimension_semantics<parallel>], iteration_bounds = array<i64: 1>, scalar_prefetch = 0 : i64, scratch_operands = 0 : i64, tpu.core_type = #tpu.core_type<tc>, window_params = [{transform_indices = @transform_0, window_bounds = array<i64: 8, 128>}, {pipeline_mode = #tpu.pipeline_mode<synchronous>, transform_indices = @transform_1, window_bounds = array<i64: 128, 128>}, {pipeline_mode = #tpu.pipeline_mode<synchronous>, transform_indices = @transform_2, window_bounds = array<i64: 1, 128>}, {pipeline_mode = #tpu.pipeline_mode<synchronous>, transform_indices = @transform_3, window_bounds = array<i64: 128, 128>}, {pipeline_mode = #tpu.pipeline_mode<synchronous>, transform_indices = @transform_4, window_bounds = array<i64: 1, 128>}, {pipeline_mode = #tpu.pipeline_mode<synchronous>, transform_indices = @transform_5, window_bounds = array<i64: 128, 128>}, {pipeline_mode = #tpu.pipeline_mode<synchronous>, transform_indices = @transform_6, window_bounds = array<i64: 1, 128>}, {pipeline_mode = #tpu.pipeline_mode<synchronous>, transform_indices = @transform_7, window_bounds = array<i64: 128, 128>}, {pipeline_mode = #tpu.pipeline_mode<synchronous>, transform_indices = @transform_8, window_bounds = array<i64: 1, 128>}, {pipeline_mode = #tpu.pipeline_mode<synchronous>, transform_indices = @transform_9, window_bounds = array<i64: 128, 128>}, {pipeline_mode = #tpu.pipeline_mode<synchronous>, transform_indices = @transform_10, window_bounds = array<i64: 1, 128>}, {pipeline_mode = #tpu.pipeline_mode<synchronous>, transform_indices = @transform_11, window_bounds = array<i64: 128, 128>}, {pipeline_mode = #tpu.pipeline_mode<synchronous>, transform_indices = @transform_12, window_bounds = array<i64: 1, 128>}, {pipeline_mode = #tpu.pipeline_mode<synchronous>, transform_indices = @transform_13, window_bounds = array<i64: 128, 128>}, {pipeline_mode = #tpu.pipeline_mode<synchronous>, transform_indices = @transform_14, window_bounds = array<i64: 1, 128>}, {pipeline_mode = #tpu.pipeline_mode<synchronous>, transform_indices = @transform_15, window_bounds = array<i64: 128, 128>}, {pipeline_mode = #tpu.pipeline_mode<synchronous>, transform_indices = @transform_16, window_bounds = array<i64: 1, 128>}, {transform_indices = @transform_17, window_bounds = array<i64: 8, 128>}]} {
    %c0 = arith.constant 0 : index
    %c0_0 = arith.constant 0 : index
    %0 = vector.load %arg1[%c0, %c0_0] : memref<8x128xf32, #tpu.memory_space<vmem>>, vector<8x128xf32>
    %1 = arith.mulf %0, %0 : vector<8x128xf32>
    %cst = arith.constant dense<0.000000e+00> : vector<8xf32>
    %2 = vector.multi_reduction <add>, %1, %cst [1] : vector<8x128xf32> to vector<8xf32>
    %3 = vector.shape_cast %2 : vector<8xf32> to vector<8x1xf32>
    %cst_1 = arith.constant 3.125000e-02 : f32
    %4 = vector.broadcast %cst_1 : f32 to vector<8x1xf32>
    %5 = arith.mulf %3, %4 : vector<8x1xf32>
    %cst_2 = arith.constant 9.99999993E-9 : f32
    %6 = vector.broadcast %cst_2 : f32 to vector<8x1xf32>
    %7 = arith.addf %5, %6 : vector<8x1xf32>
    %8 = math.rsqrt %7 : vector<8x1xf32>
    %9 = vector.broadcast %8 : vector<8x1xf32> to vector<8x128xf32>
    %10 = arith.mulf %0, %9 : vector<8x128xf32>
    %c0_3 = arith.constant 0 : index
    %c0_4 = arith.constant 0 : index
    %11 = vector.load %arg2[%c0_3, %c0_4] : memref<128x128xbf16, #tpu.memory_space<vmem>>, vector<128x128xbf16>
    %c0_5 = arith.constant 0 : index
    %c0_6 = arith.constant 0 : index
    %12 = vector.load %arg3[%c0_5, %c0_6] : memref<1x128xf32, #tpu.memory_space<vmem>>, vector<1x128xf32>
    %13 = arith.truncf %10 : vector<8x128xf32> to vector<8x128xbf16>
    %cst_7 = arith.constant dense<0.000000e+00> : vector<8x128xf32>
    %14 = tpu.matmul %13, %11, %cst_7 {dimension_numbers = #tpu.dot_dimension_numbers<[1], [0], [0], [1], [0, 0, 1, 1], [], []>} : vector<8x128xbf16>, vector<128x128xbf16>, vector<8x128xf32> -> vector<8x128xf32>
    %cst_8 = arith.constant 2.500000e-03 : f32
    %15 = vector.broadcast %cst_8 : f32 to vector<8x128xf32>
    %16 = arith.mulf %14, %15 : vector<8x128xf32>
    %17 = vector.broadcast %12 : vector<1x128xf32> to vector<8x128xf32>
    %18 = arith.addf %16, %17 : vector<8x128xf32>
    %cst_9 = arith.constant 0.000000e+00 : f32
    %19 = vector.broadcast %cst_9 : f32 to vector<8x128xf32>
    %20 = arith.cmpf ogt, %18, %19 : vector<8x128xf32>
    %cst_10 = arith.constant 2.000000e-01 : f32
    %21 = vector.broadcast %cst_10 : f32 to vector<8x128xf32>
    %22 = arith.mulf %21, %18 : vector<8x128xf32>
    %23 = arith.select %20, %18, %22 : vector<8x128xi1>, vector<8x128xf32>
    %c0_11 = arith.constant 0 : index
    %c0_12 = arith.constant 0 : index
    %24 = vector.load %arg4[%c0_11, %c0_12] : memref<128x128xbf16, #tpu.memory_space<vmem>>, vector<128x128xbf16>
    %c0_13 = arith.constant 0 : index
    %c0_14 = arith.constant 0 : index
    %25 = vector.load %arg5[%c0_13, %c0_14] : memref<1x128xf32, #tpu.memory_space<vmem>>, vector<1x128xf32>
    %26 = arith.truncf %23 : vector<8x128xf32> to vector<8x128xbf16>
    %cst_15 = arith.constant dense<0.000000e+00> : vector<8x128xf32>
    %27 = tpu.matmul %26, %24, %cst_15 {dimension_numbers = #tpu.dot_dimension_numbers<[1], [0], [0], [1], [0, 0, 1, 1], [], []>} : vector<8x128xbf16>, vector<128x128xbf16>, vector<8x128xf32> -> vector<8x128xf32>
    %cst_16 = arith.constant 0.00176776689 : f32
    %28 = vector.broadcast %cst_16 : f32 to vector<8x128xf32>
    %29 = arith.mulf %27, %28 : vector<8x128xf32>
    %30 = vector.broadcast %25 : vector<1x128xf32> to vector<8x128xf32>
    %31 = arith.addf %29, %30 : vector<8x128xf32>
    %cst_17 = arith.constant 0.000000e+00 : f32
    %32 = vector.broadcast %cst_17 : f32 to vector<8x128xf32>
    %33 = arith.cmpf ogt, %31, %32 : vector<8x128xf32>
    %cst_18 = arith.constant 2.000000e-01 : f32
    %34 = vector.broadcast %cst_18 : f32 to vector<8x128xf32>
    %35 = arith.mulf %34, %31 : vector<8x128xf32>
    %36 = arith.select %33, %31, %35 : vector<8x128xi1>, vector<8x128xf32>
    %c0_19 = arith.constant 0 : index
    %c0_20 = arith.constant 0 : index
    %37 = vector.load %arg6[%c0_19, %c0_20] : memref<128x128xbf16, #tpu.memory_space<vmem>>, vector<128x128xbf16>
    %c0_21 = arith.constant 0 : index
    %c0_22 = arith.constant 0 : index
    %38 = vector.load %arg7[%c0_21, %c0_22] : memref<1x128xf32, #tpu.memory_space<vmem>>, vector<1x128xf32>
    %39 = arith.truncf %36 : vector<8x128xf32> to vector<8x128xbf16>
    %cst_23 = arith.constant dense<0.000000e+00> : vector<8x128xf32>
    %40 = tpu.matmul %39, %37, %cst_23 {dimension_numbers = #tpu.dot_dimension_numbers<[1], [0], [0], [1], [0, 0, 1, 1], [], []>} : vector<8x128xbf16>, vector<128x128xbf16>, vector<8x128xf32> -> vector<8x128xf32>
    %cst_24 = arith.constant 0.00176776689 : f32
    %41 = vector.broadcast %cst_24 : f32 to vector<8x128xf32>
    %42 = arith.mulf %40, %41 : vector<8x128xf32>
    %43 = vector.broadcast %38 : vector<1x128xf32> to vector<8x128xf32>
    %44 = arith.addf %42, %43 : vector<8x128xf32>
    %cst_25 = arith.constant 0.000000e+00 : f32
    %45 = vector.broadcast %cst_25 : f32 to vector<8x128xf32>
    %46 = arith.cmpf ogt, %44, %45 : vector<8x128xf32>
    %cst_26 = arith.constant 2.000000e-01 : f32
    %47 = vector.broadcast %cst_26 : f32 to vector<8x128xf32>
    %48 = arith.mulf %47, %44 : vector<8x128xf32>
    %49 = arith.select %46, %44, %48 : vector<8x128xi1>, vector<8x128xf32>
    %c0_27 = arith.constant 0 : index
    %c0_28 = arith.constant 0 : index
    %50 = vector.load %arg8[%c0_27, %c0_28] : memref<128x128xbf16, #tpu.memory_space<vmem>>, vector<128x128xbf16>
    %c0_29 = arith.constant 0 : index
    %c0_30 = arith.constant 0 : index
    %51 = vector.load %arg9[%c0_29, %c0_30] : memref<1x128xf32, #tpu.memory_space<vmem>>, vector<1x128xf32>
    %52 = arith.truncf %49 : vector<8x128xf32> to vector<8x128xbf16>
    %cst_31 = arith.constant dense<0.000000e+00> : vector<8x128xf32>
    %53 = tpu.matmul %52, %50, %cst_31 {dimension_numbers = #tpu.dot_dimension_numbers<[1], [0], [0], [1], [0, 0, 1, 1], [], []>} : vector<8x128xbf16>, vector<128x128xbf16>, vector<8x128xf32> -> vector<8x128xf32>
    %cst_32 = arith.constant 0.00176776689 : f32
    %54 = vector.broadcast %cst_32 : f32 to vector<8x128xf32>
    %55 = arith.mulf %53, %54 : vector<8x128xf32>
    %56 = vector.broadcast %51 : vector<1x128xf32> to vector<8x128xf32>
    %57 = arith.addf %55, %56 : vector<8x128xf32>
    %cst_33 = arith.constant 0.000000e+00 : f32
    %58 = vector.broadcast %cst_33 : f32 to vector<8x128xf32>
    %59 = arith.cmpf ogt, %57, %58 : vector<8x128xf32>
    %cst_34 = arith.constant 2.000000e-01 : f32
    %60 = vector.broadcast %cst_34 : f32 to vector<8x128xf32>
    %61 = arith.mulf %60, %57 : vector<8x128xf32>
    %62 = arith.select %59, %57, %61 : vector<8x128xi1>, vector<8x128xf32>
    %c0_35 = arith.constant 0 : index
    %c0_36 = arith.constant 0 : index
    %63 = vector.load %arg10[%c0_35, %c0_36] : memref<128x128xbf16, #tpu.memory_space<vmem>>, vector<128x128xbf16>
    %c0_37 = arith.constant 0 : index
    %c0_38 = arith.constant 0 : index
    %64 = vector.load %arg11[%c0_37, %c0_38] : memref<1x128xf32, #tpu.memory_space<vmem>>, vector<1x128xf32>
    %65 = arith.truncf %62 : vector<8x128xf32> to vector<8x128xbf16>
    %cst_39 = arith.constant dense<0.000000e+00> : vector<8x128xf32>
    %66 = tpu.matmul %65, %63, %cst_39 {dimension_numbers = #tpu.dot_dimension_numbers<[1], [0], [0], [1], [0, 0, 1, 1], [], []>} : vector<8x128xbf16>, vector<128x128xbf16>, vector<8x128xf32> -> vector<8x128xf32>
    %cst_40 = arith.constant 0.00176776689 : f32
    %67 = vector.broadcast %cst_40 : f32 to vector<8x128xf32>
    %68 = arith.mulf %66, %67 : vector<8x128xf32>
    %69 = vector.broadcast %64 : vector<1x128xf32> to vector<8x128xf32>
    %70 = arith.addf %68, %69 : vector<8x128xf32>
    %cst_41 = arith.constant 0.000000e+00 : f32
    %71 = vector.broadcast %cst_41 : f32 to vector<8x128xf32>
    %72 = arith.cmpf ogt, %70, %71 : vector<8x128xf32>
    %cst_42 = arith.constant 2.000000e-01 : f32
    %73 = vector.broadcast %cst_42 : f32 to vector<8x128xf32>
    %74 = arith.mulf %73, %70 : vector<8x128xf32>
    %75 = arith.select %72, %70, %74 : vector<8x128xi1>, vector<8x128xf32>
    %c0_43 = arith.constant 0 : index
    %c0_44 = arith.constant 0 : index
    %76 = vector.load %arg12[%c0_43, %c0_44] : memref<128x128xbf16, #tpu.memory_space<vmem>>, vector<128x128xbf16>
    %c0_45 = arith.constant 0 : index
    %c0_46 = arith.constant 0 : index
    %77 = vector.load %arg13[%c0_45, %c0_46] : memref<1x128xf32, #tpu.memory_space<vmem>>, vector<1x128xf32>
    %78 = arith.truncf %75 : vector<8x128xf32> to vector<8x128xbf16>
    %cst_47 = arith.constant dense<0.000000e+00> : vector<8x128xf32>
    %79 = tpu.matmul %78, %76, %cst_47 {dimension_numbers = #tpu.dot_dimension_numbers<[1], [0], [0], [1], [0, 0, 1, 1], [], []>} : vector<8x128xbf16>, vector<128x128xbf16>, vector<8x128xf32> -> vector<8x128xf32>
    %cst_48 = arith.constant 0.00176776689 : f32
    %80 = vector.broadcast %cst_48 : f32 to vector<8x128xf32>
    %81 = arith.mulf %79, %80 : vector<8x128xf32>
    %82 = vector.broadcast %77 : vector<1x128xf32> to vector<8x128xf32>
    %83 = arith.addf %81, %82 : vector<8x128xf32>
    %cst_49 = arith.constant 0.000000e+00 : f32
    %84 = vector.broadcast %cst_49 : f32 to vector<8x128xf32>
    %85 = arith.cmpf ogt, %83, %84 : vector<8x128xf32>
    %cst_50 = arith.constant 2.000000e-01 : f32
    %86 = vector.broadcast %cst_50 : f32 to vector<8x128xf32>
    %87 = arith.mulf %86, %83 : vector<8x128xf32>
    %88 = arith.select %85, %83, %87 : vector<8x128xi1>, vector<8x128xf32>
    %c0_51 = arith.constant 0 : index
    %c0_52 = arith.constant 0 : index
    %89 = vector.load %arg14[%c0_51, %c0_52] : memref<128x128xbf16, #tpu.memory_space<vmem>>, vector<128x128xbf16>
    %c0_53 = arith.constant 0 : index
    %c0_54 = arith.constant 0 : index
    %90 = vector.load %arg15[%c0_53, %c0_54] : memref<1x128xf32, #tpu.memory_space<vmem>>, vector<1x128xf32>
    %91 = arith.truncf %88 : vector<8x128xf32> to vector<8x128xbf16>
    %cst_55 = arith.constant dense<0.000000e+00> : vector<8x128xf32>
    %92 = tpu.matmul %91, %89, %cst_55 {dimension_numbers = #tpu.dot_dimension_numbers<[1], [0], [0], [1], [0, 0, 1, 1], [], []>} : vector<8x128xbf16>, vector<128x128xbf16>, vector<8x128xf32> -> vector<8x128xf32>
    %cst_56 = arith.constant 0.00176776689 : f32
    %93 = vector.broadcast %cst_56 : f32 to vector<8x128xf32>
    %94 = arith.mulf %92, %93 : vector<8x128xf32>
    %95 = vector.broadcast %90 : vector<1x128xf32> to vector<8x128xf32>
    %96 = arith.addf %94, %95 : vector<8x128xf32>
    %cst_57 = arith.constant 0.000000e+00 : f32
    %97 = vector.broadcast %cst_57 : f32 to vector<8x128xf32>
    %98 = arith.cmpf ogt, %96, %97 : vector<8x128xf32>
    %cst_58 = arith.constant 2.000000e-01 : f32
    %99 = vector.broadcast %cst_58 : f32 to vector<8x128xf32>
    %100 = arith.mulf %99, %96 : vector<8x128xf32>
    %101 = arith.select %98, %96, %100 : vector<8x128xi1>, vector<8x128xf32>
    %c0_59 = arith.constant 0 : index
    %c0_60 = arith.constant 0 : index
    %102 = vector.load %arg16[%c0_59, %c0_60] : memref<128x128xbf16, #tpu.memory_space<vmem>>, vector<128x128xbf16>
    %c0_61 = arith.constant 0 : index
    %c0_62 = arith.constant 0 : index
    %103 = vector.load %arg17[%c0_61, %c0_62] : memref<1x128xf32, #tpu.memory_space<vmem>>, vector<1x128xf32>
    %104 = arith.truncf %101 : vector<8x128xf32> to vector<8x128xbf16>
    %cst_63 = arith.constant dense<0.000000e+00> : vector<8x128xf32>
    %105 = tpu.matmul %104, %102, %cst_63 {dimension_numbers = #tpu.dot_dimension_numbers<[1], [0], [0], [1], [0, 0, 1, 1], [], []>} : vector<8x128xbf16>, vector<128x128xbf16>, vector<8x128xf32> -> vector<8x128xf32>
    %cst_64 = arith.constant 0.00176776689 : f32
    %106 = vector.broadcast %cst_64 : f32 to vector<8x128xf32>
    %107 = arith.mulf %105, %106 : vector<8x128xf32>
    %108 = vector.broadcast %103 : vector<1x128xf32> to vector<8x128xf32>
    %109 = arith.addf %107, %108 : vector<8x128xf32>
    %cst_65 = arith.constant 0.000000e+00 : f32
    %110 = vector.broadcast %cst_65 : f32 to vector<8x128xf32>
    %111 = arith.cmpf ogt, %109, %110 : vector<8x128xf32>
    %cst_66 = arith.constant 2.000000e-01 : f32
    %112 = vector.broadcast %cst_66 : f32 to vector<8x128xf32>
    %113 = arith.mulf %112, %109 : vector<8x128xf32>
    %114 = arith.select %111, %109, %113 : vector<8x128xi1>, vector<8x128xf32>
    %c0_67 = arith.constant 0 : index
    %c0_68 = arith.constant 0 : index
    %115 = vector.load %arg18[%c0_67, %c0_68] : memref<8x128xf32, #tpu.memory_space<vmem>>, vector<8x128xf32>
    tpu.vector_store %arg18[%c0_67, %c0_68], %114 {strides = array<i32>} : memref<8x128xf32, #tpu.memory_space<vmem>>, vector<8x128xf32>,
    return
  }
  func.func @transform_0(%arg0: i32) -> (i32, i32) {
    %c0_i32 = arith.constant 0 : i32
    %c0_i32_0 = arith.constant 0 : i32
    return %arg0, %c0_i32 : i32, i32
  }
  func.func @transform_1(%arg0: i32) -> (i32, i32) {
    %c0_i32 = arith.constant 0 : i32
    %c0_i32_0 = arith.constant 0 : i32
    %c0_i32_1 = arith.constant 0 : i32
    return %c0_i32, %c0_i32_0 : i32, i32
  }
  func.func @transform_2(%arg0: i32) -> (i32, i32) {
    %c0_i32 = arith.constant 0 : i32
    %c0_i32_0 = arith.constant 0 : i32
    %c0_i32_1 = arith.constant 0 : i32
    return %c0_i32, %c0_i32_0 : i32, i32
  }
  func.func @transform_3(%arg0: i32) -> (i32, i32) {
    %c0_i32 = arith.constant 0 : i32
    %c0_i32_0 = arith.constant 0 : i32
    %c0_i32_1 = arith.constant 0 : i32
    return %c0_i32, %c0_i32_0 : i32, i32
  }
  func.func @transform_4(%arg0: i32) -> (i32, i32) {
    %c0_i32 = arith.constant 0 : i32
    %c0_i32_0 = arith.constant 0 : i32
    %c0_i32_1 = arith.constant 0 : i32
    return %c0_i32, %c0_i32_0 : i32, i32
  }
  func.func @transform_5(%arg0: i32) -> (i32, i32) {
    %c0_i32 = arith.constant 0 : i32
    %c0_i32_0 = arith.constant 0 : i32
    %c0_i32_1 = arith.constant 0 : i32
    return %c0_i32, %c0_i32_0 : i32, i32
  }
  func.func @transform_6(%arg0: i32) -> (i32, i32) {
    %c0_i32 = arith.constant 0 : i32
    %c0_i32_0 = arith.constant 0 : i32
    %c0_i32_1 = arith.constant 0 : i32
    return %c0_i32, %c0_i32_0 : i32, i32
  }
  func.func @transform_7(%arg0: i32) -> (i32, i32) {
    %c0_i32 = arith.constant 0 : i32
    %c0_i32_0 = arith.constant 0 : i32
    %c0_i32_1 = arith.constant 0 : i32
    return %c0_i32, %c0_i32_0 : i32, i32
  }
  func.func @transform_8(%arg0: i32) -> (i32, i32) {
    %c0_i32 = arith.constant 0 : i32
    %c0_i32_0 = arith.constant 0 : i32
    %c0_i32_1 = arith.constant 0 : i32
    return %c0_i32, %c0_i32_0 : i32, i32
  }
  func.func @transform_9(%arg0: i32) -> (i32, i32) {
    %c0_i32 = arith.constant 0 : i32
    %c0_i32_0 = arith.constant 0 : i32
    %c0_i32_1 = arith.constant 0 : i32
    return %c0_i32, %c0_i32_0 : i32, i32
  }
  func.func @transform_10(%arg0: i32) -> (i32, i32) {
    %c0_i32 = arith.constant 0 : i32
    %c0_i32_0 = arith.constant 0 : i32
    %c0_i32_1 = arith.constant 0 : i32
    return %c0_i32, %c0_i32_0 : i32, i32
  }
  func.func @transform_11(%arg0: i32) -> (i32, i32) {
    %c0_i32 = arith.constant 0 : i32
    %c0_i32_0 = arith.constant 0 : i32
    %c0_i32_1 = arith.constant 0 : i32
    return %c0_i32, %c0_i32_0 : i32, i32
  }
  func.func @transform_12(%arg0: i32) -> (i32, i32) {
    %c0_i32 = arith.constant 0 : i32
    %c0_i32_0 = arith.constant 0 : i32
    %c0_i32_1 = arith.constant 0 : i32
    return %c0_i32, %c0_i32_0 : i32, i32
  }
  func.func @transform_13(%arg0: i32) -> (i32, i32) {
    %c0_i32 = arith.constant 0 : i32
    %c0_i32_0 = arith.constant 0 : i32
    %c0_i32_1 = arith.constant 0 : i32
    return %c0_i32, %c0_i32_0 : i32, i32
  }
  func.func @transform_14(%arg0: i32) -> (i32, i32) {
    %c0_i32 = arith.constant 0 : i32
    %c0_i32_0 = arith.constant 0 : i32
    %c0_i32_1 = arith.constant 0 : i32
    return %c0_i32, %c0_i32_0 : i32, i32
  }
  func.func @transform_15(%arg0: i32) -> (i32, i32) {
    %c0_i32 = arith.constant 0 : i32
    %c0_i32_0 = arith.constant 0 : i32
    %c0_i32_1 = arith.constant 0 : i32
    return %c0_i32, %c0_i32_0 : i32, i32
  }
  func.func @transform_16(%arg0: i32) -> (i32, i32) {
    %c0_i32 = arith.constant 0 : i32
    %c0_i32_0 = arith.constant 0 : i32
    %c0_i32_1 = arith.constant 0 : i32
    return %c0_i32, %c0_i32_0 : i32, i32
  }
  func.func @transform_17(%arg0: i32) -> (i32, i32) {
    %c0_i32 = arith.constant 0 : i32
    %c0_i32_0 = arith.constant 0 : i32
    return %arg0, %c0_i32 : i32, i32
  }
}

</mosaic_0001>

<bundles_post_ra>
// kernel: tpu_custom_call.1
= control target key start
LH: loop header
LB: loop body
LE: loop exit
PB: predicated region body
PF: predicated region fallthrough
CT: control target
= control target key end

     0   :  { %s2110_s0 = inlined_call_operand.hbm [shape: f32[8,128], index: 0, kind: input, shape index: {}]   ;;  %s2111_s1 = inlined_call_operand.hbm [shape: bf16[128,128], index: 1, kind: input, shape index: {}]   ;;  %s2112_s2 = inlined_call_operand.vmem [shape: f32[1,128], index: 2, kind: input, shape index: {}]   ;;  %s2113_s3 = inlined_call_operand.hbm [shape: bf16[128,128], index: 3, kind: input, shape index: {}]   ;;  %s2114_s4 = inlined_call_operand.vmem [shape: f32[1,128], index: 4, kind: input, shape index: {}]   ;;  %s2115_s5 = inlined_call_operand.hbm [shape: bf16[128,128], index: 5, kind: input, shape index: {}]   ;;  %s2116_s6 = inlined_call_operand.vmem [shape: f32[1,128], index: 6, kind: input, shape index: {}]   ;;  %s2117_s7 = inlined_call_operand.hbm [shape: bf16[128,128], index: 7, kind: input, shape index: {}]   ;;  %s2118_s8 = inlined_call_operand.vmem [shape: f32[1,128], index: 8, kind: input, shape index: {}]   ;;  %s2119_s9 = inlined_call_operand.hbm [shape: bf16[128,128], index: 9, kind: input, shape index: {}]   ;;  %s2120_s10 = inlined_call_operand.vmem [shape: f32[1,128], index: 10, kind: input, shape index: {}]   ;;  %s2121_s11 = inlined_call_operand.hbm [shape: bf16[128,128], index: 11, kind: input, shape index: {}]   ;;  %s2122_s12 = inlined_call_operand.vmem [shape: f32[1,128], index: 12, kind: input, shape index: {}]   ;;  %s2123_s13 = inlined_call_operand.hbm [shape: bf16[128,128], index: 13, kind: input, shape index: {}]   ;;  %s2124_s14 = inlined_call_operand.vmem [shape: f32[1,128], index: 14, kind: input, shape index: {}]   ;;  %s2125_s15 = inlined_call_operand.hbm [shape: bf16[128,128], index: 15, kind: input, shape index: {}]   ;;  %s2126_s16 = inlined_call_operand.vmem [shape: f32[1,128], index: 16, kind: input, shape index: {}]   ;;  %s2127_s17 = inlined_call_operand.hbm [shape: f32[8,128], index: 17, kind: output, shape index: {}]  }
   0x1   :  { %2131 = sst [smem:[#allocation24_spill]] %s2110_s0 }
   0x2   :  { %2132 = sst [smem:[#allocation25_spill]] %s2111_s1 }
   0x3   :  { %2133 = sst [smem:[#allocation26_spill]] %s2126_s16 }
   0x4   :  { %2134 = sst [smem:[#allocation27_spill]] %s2127_s17 }
   0x5   :  { %22 = vsyncpa [#allocation3], 0 }
   0x6   :  { %23 = vsyncpa [#allocation6], 0 }
   0x7   :  { %24 = vsyncpa [#allocation9], 0 }
   0x8   :  { %25 = vsyncpa [#allocation12], 0 }
   0x9   :  { %26 = vsyncpa [#allocation15], 0 }
   0xa   :  { %27 = vsyncpa [#allocation4], 0  ;;  %s1758_s24 = smov [#allocation5]   ;;  %s2135_s28 = sld [smem:[#allocation25_spill]] }
   0xb   :  { %s43_s25 = sshll.u32 %s1758_s24, 4  ;;  %s44_s25 = int_to_ptr.vmem [resolvable:$true] %s43_s25 }
  0x10   :  { %s1526_s29 = scalar_lea.hbm %s2135_s28, 1024 }
  0x11   :  { %p1527_p0 = scmp.ne.s32.totalorder %s2135_s28, %s1526_s29  ;;  %p1530_p1 = scmp.lt.u32.totalorder %s1526_s29, %s2135_s28 }
  0x13   :  { %p1532_p2 = pnand %p1530_p1, %p1527_p0 }
  0x15   :  { %1535 = shalt.err (!%p1532_p2)
}
  0x16   :  { %s1536_s1 = scalar_lea.vmem %s44_s25, 1024  ;;  %p1541_p4 = scmp.lt.s32.totalorder %s44_s25, %s44_s25 }
  0x17   :  { %p1537_p3 = scmp.ne.s32.totalorder %s44_s25, %s1536_s1  ;;  %p1542_p5 = scmp.lt.s32.totalorder %s1536_s1, %s1536_s1 }
  0x19   :  { %p1543_p6 = por %p1542_p5, %p1541_p4 }
  0x1b   :  { %p1544_p7 = pnand %p1543_p6, %p1537_p3 }
  0x1d   :  { %1547 = shalt.err (!%p1544_p7)
}
  0x1e   :  { %s1759_s20 = smov 64   ;;  %s1760_s21 = smov 4  }
  0x1f   :  { %49 = dma.hbm_to_vmem [thread:$0]  %s2135_s28, 1024, %s44_s25, [#allocation6], %s1759_s20, %s1759_s20, %s1760_s21  }
  0x20   :  { %s1761_s24 = smov [#allocation8]   ;;  %s1762_s27 = smov [#allocation11]  }
  0x21   :  { %s71_s26 = sshll.u32 %s1761_s24, 4  ;;  %s99_s29 = sshll.u32 %s1762_s27, 4  ;;  %s72_s26 = int_to_ptr.vmem [resolvable:$true] %s71_s26  ;;  %s100_s29 = int_to_ptr.vmem [resolvable:$true] %s99_s29 }
  0x22   :  { %s1548_s18 = scalar_lea.hbm %s2115_s5, 1024 }
  0x23   :  { %p1549_p8 = scmp.ne.s32.totalorder %s2115_s5, %s1548_s18  ;;  %p1552_p9 = scmp.lt.u32.totalorder %s1548_s18, %s2115_s5 }
  0x25   :  { %p1554_p10 = pnand %p1552_p9, %p1549_p8 }
  0x27   :  { %1557 = shalt.err (!%p1554_p10)
}
  0x28   :  { %s1558_s25 = scalar_lea.vmem %s72_s26, 1024  ;;  %p1563_p12 = scmp.lt.s32.totalorder %s72_s26, %s72_s26 }
  0x29   :  { %p1559_p11 = scmp.ne.s32.totalorder %s72_s26, %s1558_s25  ;;  %p1564_p13 = scmp.lt.s32.totalorder %s1558_s25, %s1558_s25 }
  0x2b   :  { %p1565_p0 = por %p1564_p13, %p1563_p12 }
  0x2d   :  { %p1566_p1 = pnand %p1565_p0, %p1559_p11 }
  0x2f   :  { %1569 = shalt.err (!%p1566_p1)
}
  0x30   :  { %77 = dma.hbm_to_vmem [thread:$0]  %s2115_s5, 1024, %s72_s26, [#allocation9], %s1759_s20, %s1759_s20, %s1760_s21  }
  0x31   :  { %s1570_s17 = scalar_lea.hbm %s2119_s9, 1024 }
  0x32   :  { %p1571_p2 = scmp.ne.s32.totalorder %s2119_s9, %s1570_s17  ;;  %p1574_p3 = scmp.lt.u32.totalorder %s1570_s17, %s2119_s9 }
  0x34   :  { %p1576_p4 = pnand %p1574_p3, %p1571_p2 }
  0x36   :  { %1579 = shalt.err (!%p1576_p4)
}
  0x37   :  { %s1580_s18 = scalar_lea.vmem %s100_s29, 1024  ;;  %p1585_p6 = scmp.lt.s32.totalorder %s100_s29, %s100_s29 }
  0x38   :  { %p1581_p5 = scmp.ne.s32.totalorder %s100_s29, %s1580_s18  ;;  %p1586_p7 = scmp.lt.s32.totalorder %s1580_s18, %s1580_s18 }
  0x3a   :  { %p1587_p8 = por %p1586_p7, %p1585_p6 }
  0x3c   :  { %p1588_p9 = pnand %p1587_p8, %p1581_p5 }
  0x3e   :  { %1591 = shalt.err (!%p1588_p9)
}
  0x3f   :  { %105 = dma.hbm_to_vmem [thread:$0]  %s2119_s9, 1024, %s100_s29, [#allocation12], %s1759_s20, %s1759_s20, %s1760_s21  }
  0x40   :  { %s1763_s19 = smov [#allocation14]   ;;  %s1764_s25 = smov [#allocation2]  }
  0x41   :  { %s127_s1 = sshll.u32 %s1763_s19, 4  ;;  %s34_s28 = sshll.u32 %s1764_s25, 4  ;;  %s128_s1 = int_to_ptr.vmem [resolvable:$true] %s127_s1  ;;  %s35_s28 = int_to_ptr.vmem [resolvable:$true] %s34_s28 }
  0x42   :  { %s1592_s16 = scalar_lea.hbm %s2123_s13, 1024 }
  0x43   :  { %p1593_p10 = scmp.ne.s32.totalorder %s2123_s13, %s1592_s16  ;;  %p1596_p11 = scmp.lt.u32.totalorder %s1592_s16, %s2123_s13 }
  0x45   :  { %p1598_p12 = pnand %p1596_p11, %p1593_p10 }
  0x47   :  { %1601 = shalt.err (!%p1598_p12)
}
  0x48   :  { %s1602_s9 = scalar_lea.vmem %s128_s1, 1024  ;;  %p1607_p0 = scmp.lt.s32.totalorder %s128_s1, %s128_s1 }
  0x49   :  { %p1603_p13 = scmp.ne.s32.totalorder %s128_s1, %s1602_s9  ;;  %p1608_p1 = scmp.lt.s32.totalorder %s1602_s9, %s1602_s9 }
  0x4b   :  { %p1609_p2 = por %p1608_p1, %p1607_p0 }
  0x4d   :  { %p1610_p3 = pnand %p1609_p2, %p1603_p13 }
  0x4f   :  { %1613 = shalt.err (!%p1610_p3)
}
  0x50   :  { %133 = dma.hbm_to_vmem [thread:$0]  %s2123_s13, 1024, %s128_s1, [#allocation15], %s1759_s20, %s1759_s20, %s1760_s21  }
  0x51   :  { %s2136_s26 = sld [smem:[#allocation24_spill]] }
  0x57   :  { %s1614_s19 = scalar_lea.hbm %s2136_s26, 128 }
  0x58   :  { %p1615_p4 = scmp.ne.s32.totalorder %s2136_s26, %s1614_s19  ;;  %p1618_p5 = scmp.lt.u32.totalorder %s1614_s19, %s2136_s26 }
  0x5a   :  { %p1620_p6 = pnand %p1618_p5, %p1615_p4 }
  0x5c   :  { %1623 = shalt.err (!%p1620_p6)
}
  0x5d   :  { %s1624_s17 = scalar_lea.vmem %s35_s28, 128  ;;  %p1629_p8 = scmp.lt.s32.totalorder %s35_s28, %s35_s28 }
  0x5e   :  { %p1625_p7 = scmp.ne.s32.totalorder %s35_s28, %s1624_s17  ;;  %p1630_p9 = scmp.lt.s32.totalorder %s1624_s17, %s1624_s17 }
  0x60   :  { %p1631_p10 = por %p1630_p9, %p1629_p8 }
  0x62   :  { %p1632_p11 = pnand %p1631_p10, %p1625_p7 }
  0x64   :  { %1635 = shalt.err (!%p1632_p11)
}
  0x65   :  { %37 = dma.hbm_to_vmem [thread:$0]  %s2136_s26, 128, %s35_s28, [#allocation3]  }
  0x66   :  { %s1765_s24 = smov [#allocation7]   ;;  %s1766_s0 = smov [#allocation10]  }
  0x67   :  { %s57_s27 = sshll.u32 %s1765_s24, 4  ;;  %s85_s9 = sshll.u32 %s1766_s0, 4  ;;  %s58_s27 = int_to_ptr.vmem [resolvable:$true] %s57_s27  ;;  %s86_s9 = int_to_ptr.vmem [resolvable:$true] %s85_s9 }
  0x68   :  { %s1636_s18 = scalar_lea.hbm %s2113_s3, 1024 }
  0x69   :  { %p1637_p12 = scmp.ne.s32.totalorder %s2113_s3, %s1636_s18  ;;  %p1640_p13 = scmp.lt.u32.totalorder %s1636_s18, %s2113_s3 }
  0x6b   :  { %p1642_p0 = pnand %p1640_p13, %p1637_p12 }
  0x6d   :  { %1645 = shalt.err (!%p1642_p0)
}
  0x6e   :  { %s1646_s28 = scalar_lea.vmem %s58_s27, 1024  ;;  %p1651_p2 = scmp.lt.s32.totalorder %s58_s27, %s58_s27 }
  0x6f   :  { %p1647_p1 = scmp.ne.s32.totalorder %s58_s27, %s1646_s28  ;;  %p1652_p3 = scmp.lt.s32.totalorder %s1646_s28, %s1646_s28 }
  0x71   :  { %p1653_p4 = por %p1652_p3, %p1651_p2 }
  0x73   :  { %p1654_p5 = pnand %p1653_p4, %p1647_p1 }
  0x75   :  { %1657 = shalt.err (!%p1654_p5)
}
  0x76   :  { %63 = dma.hbm_to_vmem [thread:$0]  %s2113_s3, 1024, %s58_s27, [#allocation6], %s1759_s20, %s1759_s20, %s1760_s21  }
  0x77   :  { %s1658_s13 = scalar_lea.hbm %s2117_s7, 1024 }
  0x78   :  { %p1659_p6 = scmp.ne.s32.totalorder %s2117_s7, %s1658_s13  ;;  %p1662_p7 = scmp.lt.u32.totalorder %s1658_s13, %s2117_s7 }
  0x7a   :  { %p1664_p8 = pnand %p1662_p7, %p1659_p6 }
  0x7c   :  { %1667 = shalt.err (!%p1664_p8)
}
  0x7d   :  { %s1668_s30 = scalar_lea.vmem %s86_s9, 1024  ;;  %p1673_p10 = scmp.lt.s32.totalorder %s86_s9, %s86_s9 }
  0x7e   :  { %p1669_p9 = scmp.ne.s32.totalorder %s86_s9, %s1668_s30  ;;  %p1674_p11 = scmp.lt.s32.totalorder %s1668_s30, %s1668_s30 }
  0x80   :  { %p1675_p12 = por %p1674_p11, %p1673_p10 }
  0x82   :  { %p1676_p13 = pnand %p1675_p12, %p1669_p9 }
  0x84   :  { %1679 = shalt.err (!%p1676_p13)
}
  0x85   :  { %91 = dma.hbm_to_vmem [thread:$0]  %s2117_s7, 1024, %s86_s9, [#allocation9], %s1759_s20, %s1759_s20, %s1760_s21  }
  0x86   :  { %s1767_s18 = smov [#allocation13]   ;;  %s1768_s19 = smov [#allocation16]  }
  0x87   :  { %s113_s5 = sshll.u32 %s1767_s18, 4  ;;  %s141_s25 = sshll.u32 %s1768_s19, 4  ;;  %s114_s5 = int_to_ptr.vmem [resolvable:$true] %s113_s5  ;;  %s142_s25 = int_to_ptr.vmem [resolvable:$true] %s141_s25 }
  0x88   :  { %s1680_s26 = scalar_lea.hbm %s2121_s11, 1024 }
  0x89   :  { %p1681_p0 = scmp.ne.s32.totalorder %s2121_s11, %s1680_s26  ;;  %p1684_p1 = scmp.lt.u32.totalorder %s1680_s26, %s2121_s11 }
  0x8b   :  { %p1686_p2 = pnand %p1684_p1, %p1681_p0 }
  0x8d   :  { %1689 = shalt.err (!%p1686_p2)
}
  0x8e   :  { %s1690_s7 = scalar_lea.vmem %s114_s5, 1024  ;;  %p1695_p4 = scmp.lt.s32.totalorder %s114_s5, %s114_s5 }
  0x8f   :  { %p1691_p3 = scmp.ne.s32.totalorder %s114_s5, %s1690_s7  ;;  %p1696_p5 = scmp.lt.s32.totalorder %s1690_s7, %s1690_s7 }
  0x91   :  { %p1697_p6 = por %p1696_p5, %p1695_p4 }
  0x93   :  { %p1698_p7 = pnand %p1697_p6, %p1691_p3 }
  0x95   :  { %1701 = shalt.err (!%p1698_p7)
}
  0x96   :  { %119 = dma.hbm_to_vmem [thread:$0]  %s2121_s11, 1024, %s114_s5, [#allocation12], %s1759_s20, %s1759_s20, %s1760_s21  }
  0x97   :  { %s1702_s29 = scalar_lea.hbm %s2125_s15, 1024 }
  0x98   :  { %p1703_p8 = scmp.ne.s32.totalorder %s2125_s15, %s1702_s29  ;;  %p1706_p9 = scmp.lt.u32.totalorder %s1702_s29, %s2125_s15 }
  0x9a   :  { %p1708_p10 = pnand %p1706_p9, %p1703_p8 }
  0x9c   :  { %1711 = shalt.err (!%p1708_p10)
}
  0x9d   :  { %s1712_s19 = scalar_lea.vmem %s142_s25, 1024  ;;  %p1717_p12 = scmp.lt.s32.totalorder %s142_s25, %s142_s25 }
  0x9e   :  { %p1713_p11 = scmp.ne.s32.totalorder %s142_s25, %s1712_s19  ;;  %p1718_p13 = scmp.lt.s32.totalorder %s1712_s19, %s1712_s19 }
  0xa0   :  { %p1719_p0 = por %p1718_p13, %p1717_p12 }
  0xa2   :  { %p1720_p1 = pnand %p1719_p0, %p1713_p11 }
  0xa4   :  { %1723 = shalt.err (!%p1720_p1)
}
  0xa5   :  { %147 = dma.hbm_to_vmem [thread:$0]  %s2125_s15, 1024, %s142_s25, [#allocation15], %s1759_s20, %s1759_s20, %s1760_s21  }
  0xa6   :  { %1746 = dma.done.wait [#allocation3], 128  }
  0xa7   :  { %1747 = vsyncadd [#allocation3], 4294967168 }
  0xa8   :  { %1748 = dma.done.wait [#allocation6], 2048  }
  0xa9   :  { %1749 = vsyncadd [#allocation6], 4294965248 }
  0xaa   :  { %1750 = dma.done.wait [#allocation9], 2048  }
  0xab   :  { %1751 = vsyncadd [#allocation9], 4294965248 }
  0xac   :  { %1752 = dma.done.wait [#allocation12], 2048  }
  0xad   :  { %1753 = vsyncadd [#allocation12], 4294965248 }
  0xae   :  { %1754 = dma.done.wait [#allocation15], 2048  }
  0xaf   :  { %1755 = vsyncadd [#allocation15], 4294965248  ;;  %v1769_v0 = vmov 0.0   ;;  %v178_v1 = vld [vmem:[#allocation2] sm:$0xff]  ;;  %v1460_v3 = vld [vmem:[#allocation5] sm:$0xff]   ;;  %vm1770_vm0 = vmmov 0  }
  0xb0   :  { %1286 = vmatprep.subr.bf16.mxu0 %v1769_v0  ;;  %1306 = vmatprep.subr.bf16.mxu1 %v1769_v0  ;;  %v179_v2 = vmul.f32 %v178_v1, %v178_v1  ;;  %v1461_v4 = vld [vmem:[#allocation5 + $0x8] sm:$0xff]   ;;  %v1462_v5 = vld [vmem:[#allocation5 + $0x10] sm:$0xff]   ;;  %v1463_v6 = vld [vmem:[#allocation5 + $0x18] sm:$0xff]   ;;  %s2137_s13 = sld [smem:[#allocation26_spill]] }
  0xb1   :  { %1287 = vmatpush3.bf16.msra.mxu0 %v1460_v3  ;;  %v1464_v7 = vld [vmem:[#allocation5 + $0x20] sm:$0xff]   ;;  %v1465_v8 = vld [vmem:[#allocation5 + $0x28] sm:$0xff]   ;;  %1302 = vmatprep.mubr.msk.bf16.mxu0 %vm1770_vm0, %v1769_v0  ;;  %v1466_v9 = vld [vmem:[#allocation5 + $0x30] sm:$0xff]  }
  0xb2   :  { %180 = vadd.xlane.f32.xlu0 %v179_v2  ;;  %1288 = vmatprep.subr.bf16.mxu0 %v1769_v0  ;;  %v1467_v10 = vld [vmem:[#allocation5 + $0x38] sm:$0xff]   ;;  %v1468_v11 = vld [vmem:[#allocation7] sm:$0xff]   ;;  %v1469_v12 = vld [vmem:[#allocation7 + $0x8] sm:$0xff]  }
  0xb3   :  { %1322 = vmatprep.mubr.msk.bf16.mxu1 %vm1770_vm0, %v1769_v0  ;;  %1307 = vmatpush3.bf16.msra.mxu1 %v1468_v11  ;;  %v1470_v13 = vld [vmem:[#allocation7 + $0x10] sm:$0xff]   ;;  %v1471_v14 = vld [vmem:[#allocation7 + $0x18] sm:$0xff]   ;;  %v1472_v15 = vld [vmem:[#allocation7 + $0x20] sm:$0xff]  }
  0xb4   :  { %1308 = vmatprep.subr.bf16.mxu1 %v1769_v0  ;;  %v1473_v16 = vld [vmem:[#allocation7 + $0x28] sm:$0xff]   ;;  %v1474_v23 = vld [vmem:[#allocation7 + $0x30] sm:$0xff]   ;;  %v1475_v24 = vld [vmem:[#allocation7 + $0x38] sm:$0xff]  }
  0xb5   :  { %1289 = vmatpush3.bf16.msra.mxu0 %v1461_v4  ;;  %v1476_v25 = vld [vmem:[#allocation8] sm:$0xff]   ;;  %v1477_v26 = vld [vmem:[#allocation8 + $0x8] sm:$0xff]   ;;  %v1478_v27 = vld [vmem:[#allocation8 + $0x10] sm:$0xff]  }
  0xb6   :  { %1290 = vmatprep.subr.bf16.mxu0 %v1769_v0  ;;  %v1479_v28 = vld [vmem:[#allocation8 + $0x18] sm:$0xff]   ;;  %v1480_v29 = vld [vmem:[#allocation8 + $0x20] sm:$0xff]   ;;  %v1481_v30 = vld [vmem:[#allocation8 + $0x28] sm:$0xff]  }
  0xb7   :  { %1309 = vmatpush3.bf16.msra.mxu1 %v1469_v12  ;;  %v1150_v31 = vld [vmem:[%s2112_s2] ss:$0 sm:$0xff]  ;;  %v1482_v41 = vld [vmem:[#allocation8 + $0x30] sm:$0xff]   ;;  %v1484_v43 = vld [vmem:[#allocation10] sm:$0xff]  }
  0xb8   :  { %1310 = vmatprep.subr.bf16.mxu1 %v1769_v0  ;;  %v1483_v42 = vld [vmem:[#allocation8 + $0x38] sm:$0xff]   ;;  %v1485_v44 = vld [vmem:[#allocation10 + $0x8] sm:$0xff]   ;;  %v1486_v45 = vld [vmem:[#allocation10 + $0x10] sm:$0xff]  }
  0xb9   :  { %1291 = vmatpush3.bf16.msra.mxu0 %v1462_v5  ;;  %v1487_v46 = vld [vmem:[#allocation10 + $0x18] sm:$0xff]   ;;  %v1488_v47 = vld [vmem:[#allocation10 + $0x20] sm:$0xff]   ;;  %v1489_v48 = vld [vmem:[#allocation10 + $0x28] sm:$0xff]  }
  0xba   :  { %1292 = vmatprep.subr.bf16.mxu0 %v1769_v0  ;;  %v1159_v49 = vld [vmem:[%s2114_s4] ss:$0 sm:$0xff]  ;;  %v1490_v59 = vld [vmem:[#allocation10 + $0x30] sm:$0xff]   ;;  %v1492_v61 = vld [vmem:[#allocation11] sm:$0xff]  }
  0xbb   :  { %1311 = vmatpush3.bf16.msra.mxu1 %v1470_v13  ;;  %v1491_v60 = vld [vmem:[#allocation10 + $0x38] sm:$0xff]   ;;  %v1493_v62 = vld [vmem:[#allocation11 + $0x8] sm:$0xff]   ;;  %v1494_v63 = vld [vmem:[#allocation11 + $0x10] sm:$0xff]  }
  0xbc   :  { %1312 = vmatprep.subr.bf16.mxu1 %v1769_v0  ;;  %v1496_v2 = vld [vmem:[#allocation11 + $0x20] sm:$0xff]   ;;  %v1497_v3 = vld [vmem:[#allocation11 + $0x28] sm:$0xff]   ;;  %v1168_v4 = vld [vmem:[%s2116_s6] ss:$0 sm:$0xff] }
  0xbd   :  { %1293 = vmatpush3.bf16.msra.mxu0 %v1463_v6 }
  0xbe   :  { %1294 = vmatprep.subr.bf16.mxu0 %v1769_v0 }
  0xbf   :  { %1313 = vmatpush3.bf16.msra.mxu1 %v1471_v14  ;;  %v1498_v14 = vld [vmem:[#allocation11 + $0x30] sm:$0xff]  }
  0xc0   :  { %1314 = vmatprep.subr.bf16.mxu1 %v1769_v0 }
  0xc1   :  { %1295 = vmatpush3.bf16.msra.mxu0 %v1464_v7 }
  0xc2   :  { %1296 = vmatprep.subr.bf16.mxu0 %v1769_v0 }
  0xc3   :  { %1315 = vmatpush3.bf16.msra.mxu1 %v1472_v15  ;;  %v1499_v15 = vld [vmem:[#allocation11 + $0x38] sm:$0xff]  }
  0xc4   :  { %1316 = vmatprep.subr.bf16.mxu1 %v1769_v0 }
  0xc5   :  { %1297 = vmatpush3.bf16.msra.mxu0 %v1465_v8 }
  0xc6   :  { %1298 = vmatprep.subr.bf16.mxu0 %v1769_v0 }
  0xc7   :  { %1317 = vmatpush3.bf16.msra.mxu1 %v1473_v16  ;;  %v1500_v16 = vld [vmem:[#allocation13] sm:$0xff]  }
  0xc8   :  { %1318 = vmatprep.subr.bf16.mxu1 %v1769_v0 }
  0xc9   :  { %1299 = vmatpush3.bf16.msra.mxu0 %v1466_v9 }
  0xca   :  { %1300 = vmatprep.subr.bf16.mxu0 %v1769_v0 }
  0xcb   :  { %1319 = vmatpush3.bf16.msra.mxu1 %v1474_v23 }
  0xcc   :  { %1320 = vmatprep.subr.bf16.mxu1 %v1769_v0 }
  0xcd   :  { %1301 = vmatpush3.bf16.msra.mxu0 %v1467_v10 }
  0xce   :  { %1326 = vmatprep.subr.bf16.mxu0 %v1769_v0 }
  0xcf   :  { %1321 = vmatpush3.bf16.msra.mxu1 %v1475_v24 }
  0xd0   :  { %1346 = vmatprep.subr.bf16.mxu1 %v1769_v0 }
 0x13f   :  { %v181_v17 = vpop.xlane.xlu0 %180 }
 0x140   :  { %v182_v18 = vmul.f32 0.03125, %v181_v17  ;;  %v1501_v17 = vld [vmem:[#allocation13 + $0x8] sm:$0xff]  }
 0x142   :  { %v183_v19 = vadd.f32 1e-08, %v182_v18  ;;  %v1502_v18 = vld [vmem:[#allocation13 + $0x10] sm:$0xff]  }
 0x144   :  { %1524 = vrsqrt.f32 %v183_v19  ;;  %v1503_v19 = vld [vmem:[#allocation13 + $0x18] sm:$0xff]  }
 0x14e   :  { %v1525_v20 = vpop.eup %1524 }
 0x14f   :  { %v185_v21 = vmul.f32 %v1525_v20, %v178_v1  ;;  %v1495_v1 = vld [vmem:[#allocation11 + $0x18] sm:$0xff]   ;;  %v1504_v20 = vld [vmem:[#allocation13 + $0x20] sm:$0xff]  }
 0x151   :  { %v203_v22 = vpack.c.bf16 %v185_v21, %v185_v21  ;;  %v1505_v21 = vld [vmem:[#allocation13 + $0x28] sm:$0xff]  }
 0x153   :  { %1303 = vmatmul.mubr.bf16.vlgmr.msra.gmra.mrb[0].mxu0 %v203_v22  ;;  %v1177_v22 = vld [vmem:[%s2118_s8] ss:$0 sm:$0xff] }
 0x154   :  { %1342 = vmatprep.mubr.msk.bf16.mxu0 %vm1770_vm0, %v1769_v0  ;;  %1327 = vmatpush3.bf16.msra.mxu0 %v1476_v25 }
 0x155   :  { %1328 = vmatprep.subr.bf16.mxu0 %v1769_v0 }
 0x158   :  { %1329 = vmatpush3.bf16.msra.mxu0 %v1477_v26 }
 0x159   :  { %1330 = vmatprep.subr.bf16.mxu0 %v1769_v0 }
 0x15c   :  { %1331 = vmatpush3.bf16.msra.mxu0 %v1478_v27 }
 0x15d   :  { %1332 = vmatprep.subr.bf16.mxu0 %v1769_v0 }
 0x160   :  { %1333 = vmatpush3.bf16.msra.mxu0 %v1479_v28 }
 0x161   :  { %1334 = vmatprep.subr.bf16.mxu0 %v1769_v0 }
 0x164   :  { %1335 = vmatpush3.bf16.msra.mxu0 %v1480_v29 }
 0x165   :  { %1336 = vmatprep.subr.bf16.mxu0 %v1769_v0 }
 0x168   :  { %1337 = vmatpush3.bf16.msra.mxu0 %v1481_v30 }
 0x169   :  { %1338 = vmatprep.subr.bf16.mxu0 %v1769_v0 }
 0x16c   :  { %1339 = vmatpush3.bf16.msra.mxu0 %v1482_v41 }
 0x16d   :  { %1340 = vmatprep.subr.bf16.mxu0 %v1769_v0 }
 0x170   :  { %1341 = vmatpush3.bf16.msra.mxu0 %v1483_v42 }
 0x171   :  { %1366 = vmatprep.subr.bf16.mxu0 %v1769_v0 }
 0x226   :  { %v286_v32 = vpop.f32.mrb[0].mxu0 }
 0x227   :  { %v292_v33 = vmul.f32 0.0025, %v286_v32  ;;  %v1304_v34 = vpop.f32.mrb[1].mxu0  ;;  %v1506_v32 = vld [vmem:[#allocation13 + $0x30] sm:$0xff]  }
 0x228   :  { %v289_v35 = vpop.f32.mrb[2].mxu0  ;;  %v1508_v34 = vld [vmem:[#allocation14] sm:$0xff]  }
 0x229   :  { %v299_v36 = vadd.f32 %v1150_v31, %v292_v33  ;;  %v1305_v37 = vpop.f32.mrb[3].mxu0  ;;  %v1507_v33 = vld [vmem:[#allocation13 + $0x38] sm:$0xff]   ;;  %v1509_v35 = vld [vmem:[#allocation14 + $0x8] sm:$0xff]  }
 0x22a   :  { %v1511_v37 = vld [vmem:[#allocation14 + $0x18] sm:$0xff]  }
 0x22b   :  { %v301_v38 = vmul.f32 0.2, %v299_v36  ;;  %vm300_vm1 = vcmp.gt.f32.partialorder %v299_v36, 0.0 }
 0x22d   :  { %v302_v39 = vsel %vm300_vm1, %v299_v36, %v301_v38  ;;  %v1510_v36 = vld [vmem:[#allocation14 + $0x10] sm:$0xff]   ;;  %v1512_v38 = vld [vmem:[#allocation14 + $0x20] sm:$0xff]  }
 0x22e   :  { %v320_v40 = vpack.c.bf16 %v302_v39, %v302_v39  ;;  %v1513_v39 = vld [vmem:[#allocation14 + $0x28] sm:$0xff]  }
 0x230   :  { %1323 = vmatmul.mubr.bf16.vlgmr.msra.gmra.mrb[0].mxu1 %v320_v40  ;;  %v1186_v40 = vld [vmem:[%s2120_s10] ss:$0 sm:$0xff] }
 0x231   :  { %1362 = vmatprep.mubr.msk.bf16.mxu1 %vm1770_vm0, %v1769_v0  ;;  %1347 = vmatpush3.bf16.msra.mxu1 %v1484_v43 }
 0x232   :  { %1348 = vmatprep.subr.bf16.mxu1 %v1769_v0 }
 0x235   :  { %1349 = vmatpush3.bf16.msra.mxu1 %v1485_v44 }
 0x236   :  { %1350 = vmatprep.subr.bf16.mxu1 %v1769_v0 }
 0x239   :  { %1351 = vmatpush3.bf16.msra.mxu1 %v1486_v45 }
 0x23a   :  { %1352 = vmatprep.subr.bf16.mxu1 %v1769_v0 }
 0x23d   :  { %1353 = vmatpush3.bf16.msra.mxu1 %v1487_v46 }
 0x23e   :  { %1354 = vmatprep.subr.bf16.mxu1 %v1769_v0 }
 0x241   :  { %1355 = vmatpush3.bf16.msra.mxu1 %v1488_v47 }
 0x242   :  { %1356 = vmatprep.subr.bf16.mxu1 %v1769_v0 }
 0x245   :  { %1357 = vmatpush3.bf16.msra.mxu1 %v1489_v48 }
 0x246   :  { %1358 = vmatprep.subr.bf16.mxu1 %v1769_v0 }
 0x249   :  { %1359 = vmatpush3.bf16.msra.mxu1 %v1490_v59 }
 0x24a   :  { %1360 = vmatprep.subr.bf16.mxu1 %v1769_v0 }
 0x24d   :  { %1361 = vmatpush3.bf16.msra.mxu1 %v1491_v60 }
 0x24e   :  { %1386 = vmatprep.subr.bf16.mxu1 %v1769_v0 }
 0x303   :  { %v403_v50 = vpop.f32.mrb[0].mxu1 }
 0x304   :  { %v409_v51 = vmul.f32 0.0017677669, %v403_v50  ;;  %v1324_v52 = vpop.f32.mrb[1].mxu1  ;;  %v1514_v50 = vld [vmem:[#allocation14 + $0x30] sm:$0xff]  }
 0x305   :  { %v406_v53 = vpop.f32.mrb[2].mxu1  ;;  %v1516_v52 = vld [vmem:[#allocation16] sm:$0xff]  }
 0x306   :  { %v416_v54 = vadd.f32 %v1159_v49, %v409_v51  ;;  %v1325_v55 = vpop.f32.mrb[3].mxu1  ;;  %v1515_v51 = vld [vmem:[#allocation14 + $0x38] sm:$0xff]   ;;  %v1517_v53 = vld [vmem:[#allocation16 + $0x8] sm:$0xff]  }
 0x307   :  { %v1519_v55 = vld [vmem:[#allocation16 + $0x18] sm:$0xff]  }
 0x308   :  { %vm417_vm2 = vcmp.gt.f32.partialorder %v416_v54, 0.0  ;;  %v418_v56 = vmul.f32 0.2, %v416_v54 }
 0x30a   :  { %v419_v57 = vsel %vm417_vm2, %v416_v54, %v418_v56  ;;  %v1518_v54 = vld [vmem:[#allocation16 + $0x10] sm:$0xff]   ;;  %v1520_v56 = vld [vmem:[#allocation16 + $0x20] sm:$0xff]  }
 0x30b   :  { %v437_v58 = vpack.c.bf16 %v419_v57, %v419_v57  ;;  %v1521_v57 = vld [vmem:[#allocation16 + $0x28] sm:$0xff]  }
 0x30d   :  { %1343 = vmatmul.mubr.bf16.vlgmr.msra.gmra.mrb[4].mxu0 %v437_v58  ;;  %v1195_v58 = vld [vmem:[%s2122_s12] ss:$0 sm:$0xff] }
 0x30e   :  { %1382 = vmatprep.mubr.msk.bf16.mxu0 %vm1770_vm0, %v1769_v0  ;;  %1367 = vmatpush3.bf16.msra.mxu0 %v1492_v61 }
 0x30f   :  { %1368 = vmatprep.subr.bf16.mxu0 %v1769_v0 }
 0x312   :  { %1369 = vmatpush3.bf16.msra.mxu0 %v1493_v62 }
 0x313   :  { %1370 = vmatprep.subr.bf16.mxu0 %v1769_v0 }
 0x316   :  { %1371 = vmatpush3.bf16.msra.mxu0 %v1494_v63 }
 0x317   :  { %1372 = vmatprep.subr.bf16.mxu0 %v1769_v0 }
 0x31a   :  { %1373 = vmatpush3.bf16.msra.mxu0 %v1495_v1 }
 0x31b   :  { %1374 = vmatprep.subr.bf16.mxu0 %v1769_v0 }
 0x31e   :  { %1375 = vmatpush3.bf16.msra.mxu0 %v1496_v2 }
 0x31f   :  { %1376 = vmatprep.subr.bf16.mxu0 %v1769_v0 }
 0x322   :  { %1377 = vmatpush3.bf16.msra.mxu0 %v1497_v3 }
 0x323   :  { %1378 = vmatprep.subr.bf16.mxu0 %v1769_v0 }
 0x326   :  { %1379 = vmatpush3.bf16.msra.mxu0 %v1498_v14 }
 0x327   :  { %1380 = vmatprep.subr.bf16.mxu0 %v1769_v0 }
 0x32a   :  { %1381 = vmatpush3.bf16.msra.mxu0 %v1499_v15 }
 0x32b   :  { %1406 = vmatprep.subr.bf16.mxu0 %v1769_v0 }
 0x3e0   :  { %v520_v5 = vpop.f32.mrb[4].mxu0 }
 0x3e1   :  { %v526_v6 = vmul.f32 0.0017677669, %v520_v5  ;;  %v1344_v7 = vpop.f32.mrb[5].mxu0  ;;  %v1522_v5 = vld [vmem:[#allocation16 + $0x30] sm:$0xff]  }
 0x3e2   :  { %v523_v8 = vpop.f32.mrb[6].mxu0  ;;  %v1204_v7 = vld [vmem:[%s2124_s14] ss:$0 sm:$0xff]  ;;  %s1771_s14 = smov [#allocation17]  }
 0x3e3   :  { %v533_v9 = vadd.f32 %v1168_v4, %v526_v6  ;;  %v1345_v10 = vpop.f32.mrb[7].mxu0  ;;  %v1523_v6 = vld [vmem:[#allocation16 + $0x38] sm:$0xff]   ;;  %s1129_s7 = sshll.u32 %s1771_s14, 4  ;;  %s1130_s7 = int_to_ptr.vmem [resolvable:$true] %s1129_s7 }
 0x3e4   :  { %s1724_s9 = scalar_lea.vmem %s1130_s7, 128  ;;  %p1729_p3 = scmp.lt.s32.totalorder %s1130_s7, %s1130_s7 }
 0x3e5   :  { %vm534_vm3 = vcmp.gt.f32.partialorder %v533_v9, 0.0  ;;  %v535_v11 = vmul.f32 0.2, %v533_v9  ;;  %p1725_p2 = scmp.ne.s32.totalorder %s1130_s7, %s1724_s9  ;;  %p1730_p4 = scmp.lt.s32.totalorder %s1724_s9, %s1724_s9 }
 0x3e7   :  { %v536_v12 = vsel %vm534_vm3, %v533_v9, %v535_v11  ;;  %p1731_p5 = por %p1730_p4, %p1729_p3 }
 0x3e8   :  { %v554_v13 = vpack.c.bf16 %v536_v12, %v536_v12 }
 0x3e9   :  { %p1732_p6 = pnand %p1731_p5, %p1725_p2 }
 0x3ea   :  { %1363 = vmatmul.mubr.bf16.vlgmr.msra.gmra.mrb[4].mxu1 %v554_v13 }
 0x3eb   :  { %1402 = vmatprep.mubr.msk.bf16.mxu1 %vm1770_vm0, %v1769_v0  ;;  %1387 = vmatpush3.bf16.msra.mxu1 %v1500_v16 }
 0x3ec   :  { %1388 = vmatprep.subr.bf16.mxu1 %v1769_v0 }
 0x3ef   :  { %1389 = vmatpush3.bf16.msra.mxu1 %v1501_v17 }
 0x3f0   :  { %1390 = vmatprep.subr.bf16.mxu1 %v1769_v0 }
 0x3f3   :  { %1391 = vmatpush3.bf16.msra.mxu1 %v1502_v18 }
 0x3f4   :  { %1392 = vmatprep.subr.bf16.mxu1 %v1769_v0 }
 0x3f7   :  { %1393 = vmatpush3.bf16.msra.mxu1 %v1503_v19 }
 0x3f8   :  { %1394 = vmatprep.subr.bf16.mxu1 %v1769_v0 }
 0x3fb   :  { %1395 = vmatpush3.bf16.msra.mxu1 %v1504_v20 }
 0x3fc   :  { %1396 = vmatprep.subr.bf16.mxu1 %v1769_v0 }
 0x3ff   :  { %1397 = vmatpush3.bf16.msra.mxu1 %v1505_v21 }
 0x400   :  { %1398 = vmatprep.subr.bf16.mxu1 %v1769_v0 }
 0x403   :  { %1399 = vmatpush3.bf16.msra.mxu1 %v1506_v32 }
 0x404   :  { %1400 = vmatprep.subr.bf16.mxu1 %v1769_v0 }
 0x407   :  { %1401 = vmatpush3.bf16.msra.mxu1 %v1507_v33 }
 0x408   :  { %1426 = vmatprep.subr.bf16.mxu1 %v1769_v0 }
 0x4bd   :  { %v637_v23 = vpop.f32.mrb[4].mxu1 }
 0x4be   :  { %v643_v24 = vmul.f32 0.0017677669, %v637_v23  ;;  %v1364_v25 = vpop.f32.mrb[5].mxu1 }
 0x4bf   :  { %v640_v26 = vpop.f32.mrb[6].mxu1 }
 0x4c0   :  { %v650_v27 = vadd.f32 %v1177_v22, %v643_v24  ;;  %v1365_v28 = vpop.f32.mrb[7].mxu1 }
 0x4c2   :  { %vm651_vm4 = vcmp.gt.f32.partialorder %v650_v27, 0.0  ;;  %v652_v29 = vmul.f32 0.2, %v650_v27 }
 0x4c4   :  { %v653_v30 = vsel %vm651_vm4, %v650_v27, %v652_v29 }
 0x4c5   :  { %v671_v31 = vpack.c.bf16 %v653_v30, %v653_v30 }
 0x4c7   :  { %1383 = vmatmul.mubr.bf16.vlgmr.msra.gmra.mrb[8].mxu0 %v671_v31 }
 0x4c8   :  { %1422 = vmatprep.mubr.msk.bf16.mxu0 %vm1770_vm0, %v1769_v0  ;;  %1407 = vmatpush3.bf16.msra.mxu0 %v1508_v34 }
 0x4c9   :  { %1408 = vmatprep.subr.bf16.mxu0 %v1769_v0 }
 0x4cc   :  { %1409 = vmatpush3.bf16.msra.mxu0 %v1509_v35 }
 0x4cd   :  { %1410 = vmatprep.subr.bf16.mxu0 %v1769_v0 }
 0x4d0   :  { %1411 = vmatpush3.bf16.msra.mxu0 %v1510_v36 }
 0x4d1   :  { %1412 = vmatprep.subr.bf16.mxu0 %v1769_v0 }
 0x4d4   :  { %1413 = vmatpush3.bf16.msra.mxu0 %v1511_v37 }
 0x4d5   :  { %1414 = vmatprep.subr.bf16.mxu0 %v1769_v0 }
 0x4d8   :  { %1415 = vmatpush3.bf16.msra.mxu0 %v1512_v38 }
 0x4d9   :  { %1416 = vmatprep.subr.bf16.mxu0 %v1769_v0 }
 0x4dc   :  { %1417 = vmatpush3.bf16.msra.mxu0 %v1513_v39 }
 0x4dd   :  { %1418 = vmatprep.subr.bf16.mxu0 %v1769_v0 }
 0x4e0   :  { %1419 = vmatpush3.bf16.msra.mxu0 %v1514_v50 }
 0x4e1   :  { %1420 = vmatprep.subr.bf16.mxu0 %v1769_v0 }
 0x4e4   :  { %1421 = vmatpush3.bf16.msra.mxu0 %v1515_v51 }
 0x59a   :  { %v754_v41 = vpop.f32.mrb[8].mxu0 }
 0x59b   :  { %v760_v42 = vmul.f32 0.0017677669, %v754_v41  ;;  %v1384_v43 = vpop.f32.mrb[9].mxu0 }
 0x59c   :  { %v757_v44 = vpop.f32.mrb[10].mxu0 }
 0x59d   :  { %v767_v45 = vadd.f32 %v1186_v40, %v760_v42  ;;  %v1385_v46 = vpop.f32.mrb[11].mxu0 }
 0x59f   :  { %vm768_vm5 = vcmp.gt.f32.partialorder %v767_v45, 0.0  ;;  %v769_v47 = vmul.f32 0.2, %v767_v45 }
 0x5a1   :  { %v770_v48 = vsel %vm768_vm5, %v767_v45, %v769_v47 }
 0x5a2   :  { %v788_v49 = vpack.c.bf16 %v770_v48, %v770_v48 }
 0x5a4   :  { %1403 = vmatmul.mubr.bf16.vlgmr.msra.gmra.mrb[8].mxu1 %v788_v49 }
 0x5a5   :  { %1442 = vmatprep.mubr.msk.bf16.mxu1 %vm1770_vm0, %v1769_v0  ;;  %1427 = vmatpush3.bf16.msra.mxu1 %v1516_v52 }
 0x5a6   :  { %1428 = vmatprep.subr.bf16.mxu1 %v1769_v0 }
 0x5a9   :  { %1429 = vmatpush3.bf16.msra.mxu1 %v1517_v53 }
 0x5aa   :  { %1430 = vmatprep.subr.bf16.mxu1 %v1769_v0 }
 0x5ad   :  { %1431 = vmatpush3.bf16.msra.mxu1 %v1518_v54 }
 0x5ae   :  { %1432 = vmatprep.subr.bf16.mxu1 %v1769_v0 }
 0x5b1   :  { %1433 = vmatpush3.bf16.msra.mxu1 %v1519_v55 }
 0x5b2   :  { %1434 = vmatprep.subr.bf16.mxu1 %v1769_v0 }
 0x5b5   :  { %1435 = vmatpush3.bf16.msra.mxu1 %v1520_v56 }
 0x5b6   :  { %1436 = vmatprep.subr.bf16.mxu1 %v1769_v0 }
 0x5b9   :  { %1437 = vmatpush3.bf16.msra.mxu1 %v1521_v57 }
 0x5ba   :  { %1438 = vmatprep.subr.bf16.mxu1 %v1769_v0 }
 0x5bd   :  { %1439 = vmatpush3.bf16.msra.mxu1 %v1522_v5 }
 0x5be   :  { %1440 = vmatprep.subr.bf16.mxu1 %v1769_v0  ;;  %v1213_v0 = vld [vmem:[%s2137_s13] ss:$0 sm:$0xff] }
 0x5c1   :  { %1441 = vmatpush3.bf16.msra.mxu1 %v1523_v6 }
 0x677   :  { %v871_v59 = vpop.f32.mrb[8].mxu1 }
 0x678   :  { %v877_v60 = vmul.f32 0.0017677669, %v871_v59  ;;  %v1404_v61 = vpop.f32.mrb[9].mxu1 }
 0x679   :  { %v874_v62 = vpop.f32.mrb[10].mxu1 }
 0x67a   :  { %v884_v63 = vadd.f32 %v1195_v58, %v877_v60  ;;  %v1405_v1 = vpop.f32.mrb[11].mxu1 }
 0x67c   :  { %vm885_vm6 = vcmp.gt.f32.partialorder %v884_v63, 0.0  ;;  %v886_v2 = vmul.f32 0.2, %v884_v63 }
 0x67e   :  { %v887_v3 = vsel %vm885_vm6, %v884_v63, %v886_v2 }
 0x67f   :  { %v905_v4 = vpack.c.bf16 %v887_v3, %v887_v3 }
 0x681   :  { %1423 = vmatmul.mubr.bf16.vlgmr.msra.gmra.mrb[12].mxu0 %v905_v4 }
 0x754   :  { %v988_v8 = vpop.f32.mrb[12].mxu0 }
 0x755   :  { %v994_v9 = vmul.f32 0.0017677669, %v988_v8  ;;  %v1424_v10 = vpop.f32.mrb[13].mxu0 }
 0x756   :  { %v991_v11 = vpop.f32.mrb[14].mxu0 }
 0x757   :  { %v1001_v12 = vadd.f32 %v1204_v7, %v994_v9  ;;  %v1425_v13 = vpop.f32.mrb[15].mxu0 }
 0x759   :  { %vm1002_vm7 = vcmp.gt.f32.partialorder %v1001_v12, 0.0  ;;  %v1003_v14 = vmul.f32 0.2, %v1001_v12 }
 0x75b   :  { %v1004_v15 = vsel %vm1002_vm7, %v1001_v12, %v1003_v14 }
 0x75c   :  { %v1022_v16 = vpack.c.bf16 %v1004_v15, %v1004_v15 }
 0x75e   :  { %1443 = vmatmul.mubr.bf16.vlgmr.msra.gmra.mrb[12].mxu1 %v1022_v16 }
 0x831   :  { %v1105_v17 = vpop.f32.mrb[12].mxu1 }
 0x832   :  { %v1111_v18 = vmul.f32 0.0017677669, %v1105_v17  ;;  %v1444_v19 = vpop.f32.mrb[13].mxu1 }
 0x833   :  { %v1108_v20 = vpop.f32.mrb[14].mxu1 }
 0x834   :  { %v1118_v21 = vadd.f32 %v1213_v0, %v1111_v18  ;;  %v1445_v22 = vpop.f32.mrb[15].mxu1 }
 0x836   :  { %v1120_v23 = vmul.f32 0.2, %v1118_v21  ;;  %vm1119_vm8 = vcmp.gt.f32.partialorder %v1118_v21, 0.0 }
 0x838   :  { %v1121_v24 = vsel %vm1119_vm8, %v1118_v21, %v1120_v23 }
 0x839   :  { %1122 = vst [vmem:[#allocation17] sm:$0xff] %v1121_v24 }
 0x83a   :  { %1735 = shalt.err (!%p1732_p6)
}
 0x83b   :  { %s2138_s0 = sld [smem:[#allocation27_spill]] }
 0x841   :  { %s1736_s29 = scalar_lea.hbm %s2138_s0, 128 }
 0x842   :  { %p1737_p7 = scmp.ne.s32.totalorder %s2138_s0, %s1736_s29  ;;  %p1740_p8 = scmp.lt.u32.totalorder %s1736_s29, %s2138_s0 }
 0x844   :  { %p1742_p9 = pnand %p1740_p8, %p1737_p7 }
 0x846   :  { %1745 = shalt.err (!%p1742_p9)
}
 0x847   :  { %1132 = dma.vmem_to_hbm [thread:$0]  %s1130_s7, 128, %s2138_s0, [#allocation4]  }
 0x848   :  { %1756 = dma.done.wait [#allocation4], 128  }
 0x849   :  { %1757 = vsyncadd [#allocation4], 4294967168 }
 0x84a   :  { %1136 = vsyncpa [#allocation3], 1 }
 0x84b   :  { %1137 = vsyncpa [#allocation6], 1 }
 0x84c   :  { %1138 = vsyncpa [#allocation9], 1 }
 0x84d   :  { %1139 = vsyncpa [#allocation12], 1 }
 0x84e   :  { %1140 = vsyncpa [#allocation15], 1 }
 0x84f   :  { %1141 = vsyncpa [#allocation4], 1 }

</bundles_post_ra>
